<compile_context>
chip_gen: v5e
topology: v5e:2x2
jax: 0.10.0
libtpu: 0.0.40
codegen_flags: <defaults>
</compile_context>

<pallas_src>
import jax
import jax.numpy as jnp
from jax import lax
from jax.experimental import pallas as pl
from jax.experimental.pallas import tpu as pltpu


def _round_up(x, m):
    return (x + m - 1) // m * m


# ----------------------------- Pallas kernel --------------------------------

def _gemm_bias_relu_kernel(x_ref, w_ref, b_ref, o_ref):
    """o = relu(x @ w + b) for one (tm, tn) output tile.

    x_ref : (tm, K)  bf16   patch rows (K = kh*kw*Cin, single lane-dense dim)
    w_ref : (K, tn)  bf16   VMEM-resident (constant index_map along M)
    b_ref : (1, tn)  f32    VMEM-resident
    o_ref : (tm, tn) bf16   lane-dense output tile (tn multiple of 128)
    """
    acc = jnp.dot(x_ref[...], w_ref[...], preferred_element_type=jnp.float32)
    o_ref[...] = jnp.maximum(acc + b_ref[...], 0.0).astype(o_ref.dtype)


# --------------------------- tiling / VMEM budget ----------------------------

def _vmem_caps():
    """(vmem_limit_bytes for Mosaic, planning budget for the tile picker)."""
    try:
        cap = int(pltpu.get_tpu_info().vmem_capacity_bytes)
    except Exception:
        cap = 64 * 1024 * 1024            # conservative (v7x-sized) fallback
    return int(cap * 0.75), int(cap * 0.5)


def _pick_tile_n(cout_p):
    for tn in (512, 384, 256, 128):
        if tn <= cout_p and cout_p % tn == 0:
            return tn
    return cout_p


def _pick_tile_m(kdim, tn, budget):
    """Largest power-of-two M tile (>= 256) whose per-step working set fits the
    per-generation VMEM planning budget."""
    k_lanes = _round_up(kdim, 128)        # LHS K occupies (padded) lanes in VMEM
    k_sub = _round_up(kdim, 16)           # RHS K sublane padding (bf16)
    wgt = 2 * (k_sub * tn * 2 + _round_up(tn, 128) * 4)   # weights + bias (resident)
    best = 256
    tm = 256
    while tm <= 16384:
        inp = 2 * tm * k_lanes * 2        # bf16 LHS tile, double buffered
        out = 2 * tm * tn * 2             # bf16 output tile, double buffered
        acc = tm * tn * 4                 # f32 accumulator / epilogue temps
        if inp + out + acc + wgt > budget:
            break
        best = tm
        tm *= 2
    return best


# --------------------------- pallas_call wrapper -----------------------------

def _gemm_bias_relu(x2d, w, b, *, tile_m=None, vmem_limit=None, vmem_budget=None):
    """x2d: (M, K) bf16;  w: (K, Cout_p) bf16;  b: (1, Cout_p) f32.
    Returns (M_pad, Cout_p) bf16 with M_pad = round_up(M, tm)."""
    m, kdim = x2d.shape
    _, cout_p = w.shape
    if vmem_limit is None or vmem_budget is None:
        vmem_limit, vmem_budget = _vmem_caps()

    tn = _pick_tile_n(cout_p)
    tm = tile_m if tile_m is not None else _pick_tile_m(kdim, tn, vmem_budget)
    tm = min(tm, _round_up(m, 16))        # never larger than the (padded) problem
    m_pad = _round_up(m, tm)              # remainder handled by padding, not divisors
    if m_pad != m:
        x2d = jnp.pad(x2d, ((0, m_pad - m), (0, 0)))

    grid = (m_pad // tm, cout_p // tn)
    flops = 2 * m_pad * kdim * cout_p
    bytes_accessed = (m_pad * kdim * 2 + kdim * cout_p * 2 + cout_p * 4
                      + m_pad * cout_p * 2)

    return pl.pallas_call(
        _gemm_bias_relu_kernel,
        out_shape=jax.ShapeDtypeStruct((m_pad, cout_p), jnp.bfloat16),
        grid_spec=pltpu.PrefetchScalarGridSpec(
            num_scalar_prefetch=0,
            grid=grid,
            in_specs=[
                pl.BlockSpec((tm, kdim), lambda i, j: (i, 0)),   # patches tile
                pl.BlockSpec((kdim, tn), lambda i, j: (0, j)),   # weights (resident)
                pl.BlockSpec((1, tn), lambda i, j: (0, j)),      # bias (resident)
            ],
            out_specs=pl.BlockSpec((tm, tn), lambda i, j: (i, j)),
        ),
        compiler_params=pltpu.CompilerParams(
            dimension_semantics=("parallel", "parallel"),
            vmem_limit_bytes=vmem_limit),
        cost_estimate=pl.CostEstimate(flops=flops, transcendentals=0,
                                      bytes_accessed=bytes_accessed),
    )(x2d, w, b)


# ------------------------------- glue (JAX) ----------------------------------

def make_synthetic_net(weight_oihw, bias, stride, tile_m=None):
    """net(x_nchw) -> y_nchw : conv(k=3, s=stride, p=1) + ReLU via Pallas."""
    c_out, c_in, kh, kw = weight_oihw.shape
    assert kh == kw
    k, s, pad = kh, stride, 1
    kdim = k * k * c_in                              # single contraction dim
    cout_p = _round_up(c_out, 128)                   # lane-dense output channels
    vmem_limit, vmem_budget = _vmem_caps()           # per-generation budget

    # (Cout, Cin, KH, KW) -> (KH*KW*Cin, Cout_p) bf16; the (i, j, c) row-major
    # flattening matches the patch concatenation order in net() below.
    w = jnp.transpose(weight_oihw, (2, 3, 1, 0)).reshape(kdim, c_out)
    w = jnp.pad(w, ((0, 0), (0, cout_p - c_out))).astype(jnp.bfloat16)
    b = jnp.pad(bias, (0, cout_p - c_out)).astype(jnp.float32).reshape(1, cout_p)

    @jax.jit
    def net(x_nchw):
        n, _, h, wd = x_nchw.shape
        ho = (h + 2 * pad - k) // s + 1
        wo = (wd + 2 * pad - k) // s + 1

        # NCHW -> NHWC bf16, conv zero-padding.
        x = jnp.transpose(x_nchw.astype(jnp.bfloat16), (0, 2, 3, 1))
        x = jnp.pad(x, ((0, 0), (pad, pad), (pad, pad), (0, 0)))

        # Mini-im2col: one strided slice per (i, j) tap, concatenated along the
        # channel axis into a single lane-dense K = k*k*Cin contraction dim.
        taps = []
        for i in range(k):
            for j in range(k):
                taps.append(lax.slice(
                    x,
                    (0, i, j, 0),
                    (n, i + (ho - 1) * s + 1, j + (wo - 1) * s + 1, c_in),
                    (1, s, s, 1)))
        patches = jnp.concatenate(taps, axis=-1)     # (n, ho, wo, k*k*Cin) bf16

        m = n * ho * wo
        out2d = _gemm_bias_relu(patches.reshape(m, kdim), w, b,
                                tile_m=tile_m,
                                vmem_limit=vmem_limit,
                                vmem_budget=vmem_budget)  # (m_pad, cout_p) bf16
        out = out2d[:m, :c_out].reshape(n, ho, wo, c_out)
        # TODO(synk): return NHWC bf16 directly when the consumer allows it; the
        # NCHW f32 conversion below only exists to match the torch layout/dtype.
        return jnp.transpose(out, (0, 3, 1, 2)).astype(jnp.float32)

    return net


class BaseNetwork:
    """Common base network (JAX/Pallas port of openpifpaf BaseNetwork)."""

    def __init__(self, net, shortname, stride, out_features):
        self.net = net
        self.shortname = shortname
        self.stride = stride
        self.out_features = out_features

    def forward(self, *args):
        return self.net(*args)

    __call__ = forward


# --------------------------------- demo --------------------------------------

if __name__ == "__main__":
    key = jax.random.PRNGKey(0)
    k_x, k_w, k_b = jax.random.split(key, 3)

    batch, c_in, h, w = 2, 4, 16, 16
    out_features, stride, ksize = 32, 2, 3

    x = jax.random.normal(k_x, (batch, c_in, h, w), dtype=jnp.float32)
    weight = (jax.random.normal(k_w, (out_features, c_in, ksize, ksize),
                                dtype=jnp.float32)
              * (2.0 / (c_in * ksize * ksize)) ** 0.5)
    bias = jax.random.normal(k_b, (out_features,), dtype=jnp.float32) * 0.1

    # Reference: XLA conv on bf16-rounded inputs (matches the MXU's bf16
    # multiplies with f32 accumulation), f32 bias + ReLU.
    x_bf = x.astype(jnp.bfloat16).astype(jnp.float32)
    w_bf = weight.astype(jnp.bfloat16).astype(jnp.float32)
    ref = lax.conv_general_dilated(
        x_bf, w_bf, window_strides=(stride, stride), padding=((1, 1), (1, 1)),
        dimension_numbers=("NCHW", "OIHW", "NCHW"),
        precision=lax.Precision.HIGHEST)
    ref = jnp.maximum(ref + bias.reshape(1, -1, 1, 1), 0.0)

    # 1) Auto tile sizes (production path: tile picked from the VMEM budget).
    net_auto = make_synthetic_net(weight, bias, stride)
    # 2) Forced small tile_m=64 so this tiny demo (M = 2*8*8 = 128 rows) still
    #    exercises a multi-step, auto-pipelined grid.  Real workloads auto-pick
    #    tile_m >= 256 for MXU-M occupancy.
    net_tiled = make_synthetic_net(weight, bias, stride, tile_m=64)

    for net in (net_auto, net_tiled):
        model = BaseNetwork(net, shortname="synthetic", stride=stride,
                            out_features=out_features)
        y = jax.block_until_ready(model(x))
        assert y.shape == (batch, out_features, h // stride, w // stride), y.shape
        err = float(jnp.max(jnp.abs(y - ref)))
        assert jnp.allclose(y, ref, atol=2e-2, rtol=2e-2), err

    print("KERNEL_OK")
</pallas_src>

<mosaic_0001>
module attributes {stable_mosaic.version = 11 : i64} {
  func.func @_gemm_bias_relu_kernel(%arg0: i32, %arg1: i32, %arg2: memref<128x36xbf16, #tpu.memory_space<vmem>>, %arg3: memref<36x128xbf16, #tpu.memory_space<vmem>>, %arg4: memref<1x128xf32, #tpu.memory_space<vmem>>, %arg5: memref<128x128xbf16, #tpu.memory_space<vmem>>) attributes {dimension_semantics = [#tpu.dimension_semantics<parallel>, #tpu.dimension_semantics<parallel>], iteration_bounds = array<i64: 1, 1>, scalar_prefetch = 0 : i64, scratch_operands = 0 : i64, tpu.core_type = #tpu.core_type<tc>, window_params = [{transform_indices = @transform_0, window_bounds = array<i64: 128, 36>}, {transform_indices = @transform_1, window_bounds = array<i64: 36, 128>}, {transform_indices = @transform_2, window_bounds = array<i64: 1, 128>}, {transform_indices = @transform_3, window_bounds = array<i64: 128, 128>}]} {
    %c0 = arith.constant 0 : index
    %c0_0 = arith.constant 0 : index
    %0 = vector.load %arg2[%c0, %c0_0] : memref<128x36xbf16, #tpu.memory_space<vmem>>, vector<128x36xbf16>
    %c0_1 = arith.constant 0 : index
    %c0_2 = arith.constant 0 : index
    %1 = vector.load %arg3[%c0_1, %c0_2] : memref<36x128xbf16, #tpu.memory_space<vmem>>, vector<36x128xbf16>
    %cst = arith.constant dense<0.000000e+00> : vector<128x128xf32>
    %2 = tpu.matmul %0, %1, %cst {dimension_numbers = #tpu.dot_dimension_numbers<[1], [0], [0], [1], [0, 0, 1, 1], [], []>} : vector<128x36xbf16>, vector<36x128xbf16>, vector<128x128xf32> -> vector<128x128xf32>
    %c0_3 = arith.constant 0 : index
    %c0_4 = arith.constant 0 : index
    %3 = vector.load %arg4[%c0_3, %c0_4] : memref<1x128xf32, #tpu.memory_space<vmem>>, vector<1x128xf32>
    %4 = vector.broadcast %3 : vector<1x128xf32> to vector<128x128xf32>
    %5 = arith.addf %2, %4 : vector<128x128xf32>
    %cst_5 = arith.constant 0.000000e+00 : f32
    %6 = vector.broadcast %cst_5 : f32 to vector<128x128xf32>
    %7 = arith.maximumf %5, %6 : vector<128x128xf32>
    %8 = arith.truncf %7 : vector<128x128xf32> to vector<128x128xbf16>
    %c0_6 = arith.constant 0 : index
    %c0_7 = arith.constant 0 : index
    %9 = vector.load %arg5[%c0_6, %c0_7] : memref<128x128xbf16, #tpu.memory_space<vmem>>, vector<128x128xbf16>
    tpu.vector_store %arg5[%c0_6, %c0_7], %8 {strides = array<i32>} : memref<128x128xbf16, #tpu.memory_space<vmem>>, vector<128x128xbf16>,
    return
  }
  func.func @transform_0(%arg0: i32, %arg1: i32) -> (i32, i32) {
    %c0_i32 = arith.constant 0 : i32
    %c0_i32_0 = arith.constant 0 : i32
    return %arg0, %c0_i32 : i32, i32
  }
  func.func @transform_1(%arg0: i32, %arg1: i32) -> (i32, i32) {
    %c0_i32 = arith.constant 0 : i32
    %c0_i32_0 = arith.constant 0 : i32
    return %c0_i32, %arg1 : i32, i32
  }
  func.func @transform_2(%arg0: i32, %arg1: i32) -> (i32, i32) {
    %c0_i32 = arith.constant 0 : i32
    %c0_i32_0 = arith.constant 0 : i32
    return %c0_i32, %arg1 : i32, i32
  }
  func.func @transform_3(%arg0: i32, %arg1: i32) -> (i32, i32) {
    %c0_i32 = arith.constant 0 : i32
    return %arg0, %arg1 : i32, i32
  }
}

</mosaic_0001>

<bundles_post_ra>
// kernel: net.1
= control target key start
LH: loop header
LB: loop body
LE: loop exit
PB: predicated region body
PF: predicated region fallthrough
CT: control target
= control target key end

     0   :  { %vm120_vm0 = vcmask 1041408   ;;  %vm95_vm1 = vcmask 293888   ;;  %s428_s1 = inlined_call_operand.vmem [shape: bf16[36,128], index: 1, kind: input, shape index: {}]   ;;  %s429_s2 = inlined_call_operand.vmem [shape: f32[1,128], index: 2, kind: input, shape index: {}]   ;;  %s430_s0 = inlined_call_operand.vmem [shape: bf16[128,36], index: 0, kind: input, shape index: {}]   ;;  %s431_s3 = inlined_call_operand.vmem [shape: bf16[128,128], index: 3, kind: output, shape index: {}]  }
   0x1   :  { %v35_v0 = vld [vmem:[%s428_s1 + $0x10] sm:$0x3]  ;;  %v282_v4 = vld [vmem:[%s428_s1 + $0x8] sm:$0xff]  ;;  %v281_v5 = vld [vmem:[%s428_s1] sm:$0xff] }
   0x2   :  { %v89_v1 = vunpack.c.l.b16 %v35_v0  ;;  %v273_v6 = vld [vmem:[%s430_s0] sm:$0xff]  ;;  %v275_v7 = vld [vmem:[%s430_s0 + $0x10] sm:$0xff]  ;;  %v274_v10 = vld [vmem:[%s430_s0 + $0x8] sm:$0xff] }
   0x3   :  { %v277_v8 = vld [vmem:[%s430_s0 + $0x20] sm:$0xff]  ;;  %v279_v9 = vld [vmem:[%s430_s0 + $0x30] sm:$0xff]  ;;  %v276_v11 = vld [vmem:[%s430_s0 + $0x18] sm:$0xff] }
   0x4   :  { %v92_v2 = vpack.c.b16 %v89_v1, %v89_v1  ;;  %v278_v12 = vld [vmem:[%s430_s0 + $0x28] sm:$0xff]  ;;  %v280_v13 = vld [vmem:[%s430_s0 + $0x38] sm:$0xff]  ;;  %v339_v16 = vld [vmem:[%s429_s2] ss:$0 sm:$0xff] }
   0x6   :  { %v122_v3 = vsel %vm120_vm0, %v92_v2, 0 }
   0x7   :  { %129 = vmatpush.bf16.msra.mxu0 %v122_v3  ;;  %330 = vmatpush.bf16.msra.mxu1 %v122_v3 }
   0x8   :  { %331 = vmatpush.bf16.msra.mxu2 %v122_v3  ;;  %332 = vmatpush.bf16.msra.mxu3 %v122_v3 }
   0xb   :  { %130 = vmatpush.bf16.msra.mxu0 %v282_v4  ;;  %333 = vmatpush.bf16.msra.mxu1 %v282_v4 }
   0xc   :  { %334 = vmatpush.bf16.msra.mxu2 %v282_v4  ;;  %335 = vmatpush.bf16.msra.mxu3 %v282_v4 }
   0xf   :  { %131 = vmatpush.bf16.msra.mxu0 %v281_v5  ;;  %336 = vmatpush.bf16.msra.mxu1 %v281_v5 }
  0x10   :  { %337 = vmatpush.bf16.msra.mxu2 %v281_v5  ;;  %338 = vmatpush.bf16.msra.mxu3 %v281_v5 }
  0x12   :  { %265 = vmatmul.msk.bf16.vlgmr.msra.gmra.mxu0 %vm95_vm1, %v273_v6  ;;  %267 = vmatmul.msk.bf16.vlgmr.msra.gmra.mxu1 %vm95_vm1, %v275_v7 }
  0x13   :  { %269 = vmatmul.msk.bf16.vlgmr.msra.gmra.mxu2 %vm95_vm1, %v277_v8  ;;  %271 = vmatmul.msk.bf16.vlgmr.msra.gmra.mxu3 %vm95_vm1, %v279_v9 }
  0x22   :  { %266 = vmatmul.msk.bf16.gmra.mxu0 %vm95_vm1, %v274_v10  ;;  %268 = vmatmul.msk.bf16.gmra.mxu1 %vm95_vm1, %v276_v11 }
  0x23   :  { %270 = vmatmul.msk.bf16.gmra.mxu2 %vm95_vm1, %v278_v12  ;;  %272 = vmatmul.msk.bf16.gmra.mxu3 %vm95_vm1, %v280_v13 }
  0x8f   :  { %v133_v14 = vpop.f32.mrf.mxu0  ;;  %v143_v15 = vpop.f32.mrf.mxu1 }
  0x90   :  { %v134_v17 = vadd.f32 %v339_v16, %v133_v14  ;;  %v144_v18 = vadd.f32 %v339_v16, %v143_v15 }
  0x92   :  { %v173_v25 = vmax.f32 %v134_v17, 0.0  ;;  %v177_v26 = vmax.f32 %v144_v18, 0.0 }
  0x96   :  { %v153_v19 = vpop.f32.mrf.mxu2  ;;  %v163_v20 = vpop.f32.mrf.mxu3 }
  0x97   :  { %v135_v21 = vpop.f32.mrf.mxu0  ;;  %v145_v22 = vpop.f32.mrf.mxu1  ;;  %v154_v31 = vadd.f32 %v339_v16, %v153_v19  ;;  %v164_v32 = vadd.f32 %v339_v16, %v163_v20 }
  0x98   :  { %v136_v23 = vadd.f32 %v339_v16, %v135_v21  ;;  %v146_v24 = vadd.f32 %v339_v16, %v145_v22 }
  0x99   :  { %v181_v39 = vmax.f32 %v154_v31, 0.0  ;;  %v185_v40 = vmax.f32 %v164_v32, 0.0 }
  0x9a   :  { %v174_v27 = vmax.f32 %v136_v23, 0.0  ;;  %v178_v28 = vmax.f32 %v146_v24, 0.0 }
  0x9c   :  { %v286_v29 = vpack.c.bf16 %v174_v27, %v173_v25  ;;  %v296_v30 = vpack.c.bf16 %v178_v28, %v177_v26 }
  0x9e   :  { %287 = vst [vmem:[%s431_s3] sm:$0xff] %v286_v29   ;;  %v155_v33 = vpop.f32.mrf.mxu2  ;;  %v165_v34 = vpop.f32.mrf.mxu3 }
  0x9f   :  { %324 = vst [vmem:[%s431_s3 + $0x10] sm:$0xff] %v296_v30   ;;  %v156_v35 = vadd.f32 %v339_v16, %v155_v33  ;;  %v166_v36 = vadd.f32 %v339_v16, %v165_v34  ;;  %v138_v37 = vpop.f32.mrf.mxu0  ;;  %v148_v38 = vpop.f32.mrf.mxu1 }
  0xa0   :  { %v139_v45 = vadd.f32 %v339_v16, %v138_v37  ;;  %v149_v46 = vadd.f32 %v339_v16, %v148_v38 }
  0xa1   :  { %v182_v41 = vmax.f32 %v156_v35, 0.0  ;;  %v186_v42 = vmax.f32 %v166_v36, 0.0 }
  0xa2   :  { %v175_v53 = vmax.f32 %v139_v45, 0.0  ;;  %v179_v54 = vmax.f32 %v149_v46, 0.0 }
  0xa3   :  { %v306_v43 = vpack.c.bf16 %v182_v41, %v181_v39  ;;  %v316_v44 = vpack.c.bf16 %v186_v42, %v185_v40 }
  0xa5   :  { %326 = vst [vmem:[%s431_s3 + $0x20] sm:$0xff] %v306_v43  }
  0xa6   :  { %328 = vst [vmem:[%s431_s3 + $0x30] sm:$0xff] %v316_v44   ;;  %v158_v47 = vpop.f32.mrf.mxu2  ;;  %v168_v48 = vpop.f32.mrf.mxu3 }
  0xa7   :  { %v140_v49 = vpop.f32.mrf.mxu0  ;;  %v150_v50 = vpop.f32.mrf.mxu1  ;;  %v159_v59 = vadd.f32 %v339_v16, %v158_v47  ;;  %v169_v60 = vadd.f32 %v339_v16, %v168_v48 }
  0xa8   :  { %v141_v51 = vadd.f32 %v339_v16, %v140_v49  ;;  %v151_v52 = vadd.f32 %v339_v16, %v150_v50 }
  0xa9   :  { %v183_v1 = vmax.f32 %v159_v59, 0.0  ;;  %v187_v2 = vmax.f32 %v169_v60, 0.0 }
  0xaa   :  { %v176_v55 = vmax.f32 %v141_v51, 0.0  ;;  %v180_v56 = vmax.f32 %v151_v52, 0.0 }
  0xac   :  { %v291_v57 = vpack.c.bf16 %v176_v55, %v175_v53  ;;  %v301_v58 = vpack.c.bf16 %v180_v56, %v179_v54 }
  0xae   :  { %323 = vst [vmem:[%s431_s3 + $0x8] sm:$0xff] %v291_v57   ;;  %v160_v61 = vpop.f32.mrf.mxu2  ;;  %v170_v62 = vpop.f32.mrf.mxu3 }
  0xaf   :  { %325 = vst [vmem:[%s431_s3 + $0x18] sm:$0xff] %v301_v58   ;;  %v161_v63 = vadd.f32 %v339_v16, %v160_v61  ;;  %v171_v0 = vadd.f32 %v339_v16, %v170_v62 }
  0xb1   :  { %v184_v3 = vmax.f32 %v161_v63, 0.0  ;;  %v188_v4 = vmax.f32 %v171_v0, 0.0 }
  0xb3   :  { %v311_v5 = vpack.c.bf16 %v184_v3, %v183_v1  ;;  %v321_v6 = vpack.c.bf16 %v188_v4, %v187_v2 }
  0xb5   :  { %327 = vst [vmem:[%s431_s3 + $0x28] sm:$0xff] %v311_v5  }
  0xb6   :  { %329 = vst [vmem:[%s431_s3 + $0x38] sm:$0xff] %v321_v6  }

</bundles_post_ra>
